<compile_context>
chip_gen: v6e
topology: v6e:2x2x1
jax: 0.10.0
libtpu: 0.0.40
codegen_flags: <defaults>
</compile_context>

<pallas_src>
import math
import functools

import numpy as np
import jax
import jax.numpy as jnp
from jax import lax
from jax.experimental import pallas as pl
from jax.experimental.pallas import tpu as pltpu


# ---------------------------------------------------------------------------
# tree_util equivalents (perfect binary tree, heap node ordering, leaves last)
# ---------------------------------------------------------------------------
def pbt_depth_to_leaves(depth: int) -> int:
    return 2 ** depth


def num_pbt_nodes(num_leaves: int) -> int:
    return 2 * num_leaves - 1


def pbt_adj(depth: int) -> jnp.ndarray:
    """A[leaf, node] = 1 if `node` is on the root->leaf path (incl. the leaf)."""
    leaves = pbt_depth_to_leaves(depth)
    nodes = num_pbt_nodes(leaves)
    a = np.zeros((leaves, nodes), dtype=np.float32)
    for leaf in range(leaves):
        idx = nodes - leaves + leaf   # leaves occupy the last `leaves` heap slots
        while True:
            a[leaf, idx] = 1.0
            if idx == 0:
                break
            idx = (idx - 1) // 2
    return jnp.asarray(a)


def _round_up(x: int, m: int) -> int:
    return ((x + m - 1) // m) * m


# ---------------------------------------------------------------------------
# G-tiled spike-and-slab decode + per-tile KL partial sums
# ---------------------------------------------------------------------------
def _decoder_tile_kernel(w_ref, spike_ref, mean_ref, lnvar_ref, eps_ref, bias_ref,
                         beta_ref, aa_ref, klp_ref,
                         *, logit_0: float, lnvar_0: float, sp_logit_0: float,
                         inv_v0: float, g_total: int, tile_cols: int, ragged: bool):
    x = spike_ref[...].astype(jnp.float32)          # spike logits
    mu = mean_ref[...].astype(jnp.float32)
    lnv = lnvar_ref[...].astype(jnp.float32)

    # CSE'd transcendentals: one exp for sigmoid+softplus, one exp for the slab variance.
    e_lnv = jnp.exp(lnv)
    e = jnp.exp(-jnp.abs(x))
    r = 1.0 / (1.0 + e)                              # exact reciprocal -> pip in [0, 1]
    pip = jnp.where(x >= 0.0, r, e * r)              # sigmoid(x)
    softplus_x = jnp.maximum(x, 0.0) + jnp.log1p(e)  # softplus(x)

    # spike-and-slab reparameterised beta
    mu2 = jnp.square(mu)
    var = pip * (1.0 - pip) * mu2 + pip * e_lnv      # >= 0 by construction
    beta = (mu * pip + eps_ref[...].astype(jnp.float32) * jnp.sqrt(var)
            - bias_ref[...].astype(jnp.float32))     # bias broadcasts (1, TILE_G)
    beta_ref[...] = beta.astype(beta_ref.dtype)

    # aa = (theta @ A) @ safe_exp(beta)  -- single MXU pass per tile
    safe_beta = jnp.exp(jnp.clip(beta, -10.0, 10.0))
    aa_ref[...] = jnp.dot(w_ref[...].astype(jnp.float32), safe_beta,
                          preferred_element_type=jnp.float32).astype(aa_ref.dtype)

    # sparse KL loss: per-tile partial sum, reduced outside the kernel
    kl_pip = pip * (x - logit_0) - softplus_x + sp_logit_0
    sq_term = inv_v0 * (mu2 + e_lnv)
    kl_g = -0.5 * (1.0 + lnv - lnvar_0 - sq_term)
    kl = kl_pip + pip * kl_g
    if ragged:
        # Last tile hangs over the end of G: zero the contribution of padding columns.
        col = (pl.program_id(0) * tile_cols
               + lax.broadcasted_iota(jnp.int32, kl.shape, 1))
        kl = jnp.where(col < g_total, kl, 0.0)
    partial = jnp.sum(kl)
    klp_ref[...] = jnp.broadcast_to(partial.reshape(1, 1), klp_ref.shape)


# ---------------------------------------------------------------------------
# Wrapper
# ---------------------------------------------------------------------------
def tree_spike_slab_decoder_forward(z, spike_logit, slab_mean, slab_lnvar, bias_d, eps, A,
                                    *, pip0=0.1, v0=1.0, tile_g=None):
    """Returns (beta, beta_kl, theta, aa) matching TreeSpikeSlabDecoder.forward."""
    B, L = z.shape
    N, G = slab_mean.shape

    logit_0 = float(math.log(pip0 / (1.0 - pip0)))     # torch.logit(pip0)
    lnvar_0 = float(math.log(v0))
    sp_logit_0 = float(math.log1p(math.exp(-abs(logit_0))) + max(logit_0, 0.0))
    inv_v0 = float(math.exp(-lnvar_0))

    # ---- theta and W = theta @ A in XLA (tiny; fuses, no extra kernel launch) ----
    theta = jax.nn.softmax(z.astype(jnp.float32), axis=-1)          # (B, L)
    w = jnp.dot(theta, A.astype(jnp.float32))                       # (B, N)

    # ---- TILE_G selection from a per-generation VMEM budget ------------------
    try:
        info = pltpu.get_tpu_info()
        vmem_cap = int(getattr(info, "vmem_capacity_bytes", 64 * 1024 * 1024))
    except Exception:
        vmem_cap = 64 * 1024 * 1024                                  # conservative (v7x)
    vmem_limit = int(min(vmem_cap * 0.8, 100 * 1024 * 1024))
    budget = int(vmem_limit * 0.85)

    in_bytes = sum(jnp.dtype(a.dtype).itemsize
                   for a in (spike_logit, slab_mean, slab_lnvar, eps))
    beta_bytes = jnp.dtype(slab_mean.dtype).itemsize
    # double-buffered bytes moved per G-column (4 inputs + beta out + aa out + bias)
    per_col = 2 * (N * (in_bytes + beta_bytes) + B * 4
                   + jnp.dtype(bias_d.dtype).itemsize)
    cap_cols = max(128, (budget // max(per_col, 1)) // 128 * 128)
    cap_cols = min(cap_cols, 32768)
    user_cap = int(tile_g) if tile_g is not None else (1 << 30)

    if G <= 256 and G <= cap_cols and G <= user_cap:
        TILE_G = G                                   # single full-width tile (exempt)
    else:
        want = -(-G // 2) if G >= 256 else G         # aim for >= 2 tiles (v7x: 2 TCs)
        cand = min(_round_up(want, 128), cap_cols, 32768)
        if user_cap < cand:
            cand = max(128, (user_cap // 128) * 128)
        TILE_G = max(128, (cand // 128) * 128)
    n_tiles = -(-G // TILE_G)
    ragged = (G % TILE_G) != 0

    kernel = functools.partial(
        _decoder_tile_kernel,
        logit_0=logit_0, lnvar_0=lnvar_0, sp_logit_0=sp_logit_0, inv_v0=inv_v0,
        g_total=G, tile_cols=TILE_G, ragged=ragged,
    )

    grid_spec = pltpu.PrefetchScalarGridSpec(
        num_scalar_prefetch=0,
        grid=(n_tiles,),
        in_specs=[
            pl.BlockSpec((B, N), lambda g: (0, 0)),            # W = theta @ A (resident)
            pl.BlockSpec((N, TILE_G), lambda g: (0, g)),       # spike_logit
            pl.BlockSpec((N, TILE_G), lambda g: (0, g)),       # slab_mean
            pl.BlockSpec((N, TILE_G), lambda g: (0, g)),       # slab_lnvar
            pl.BlockSpec((N, TILE_G), lambda g: (0, g)),       # eps
            pl.BlockSpec((1, TILE_G), lambda g: (0, g)),       # bias_d
        ],
        out_specs=[
            pl.BlockSpec((N, TILE_G), lambda g: (0, g)),       # beta
            pl.BlockSpec((B, TILE_G), lambda g: (0, g)),       # aa
            pl.BlockSpec((1, 128), lambda g: (0, g)),          # per-tile KL partials
        ],
    )
    out_shapes = (
        jax.ShapeDtypeStruct((N, G), slab_mean.dtype),
        jax.ShapeDtypeStruct((B, G), jnp.float32),
        jax.ShapeDtypeStruct((1, 128 * n_tiles), jnp.float32),
    )

    beta, aa, kl_parts = pl.pallas_call(
        kernel,
        out_shape=out_shapes,
        grid_spec=grid_spec,
        compiler_params=pltpu.CompilerParams(
            # G-tiles are independent (KL is per-tile): shards across v7x's 2 TCs.
            dimension_semantics=("parallel",),
            vmem_limit_bytes=vmem_limit,
        ),
    )(w, spike_logit, slab_mean, slab_lnvar, eps, bias_d)

    beta_kl = jnp.sum(kl_parts[0, ::128])            # one partial per G-tile
    return beta, beta_kl, theta, aa


# ---------------------------------------------------------------------------
# pure-JAX reference (for correctness check)
# ---------------------------------------------------------------------------
def _reference(z, spike_logit, slab_mean, slab_lnvar, bias_d, eps, A,
               *, pip0=0.1, v0=1.0):
    logit_0 = jnp.float32(math.log(pip0 / (1.0 - pip0)))
    lnvar_0 = jnp.float32(math.log(v0))
    theta = jax.nn.softmax(z, axis=-1)
    pip = jax.nn.sigmoid(spike_logit)
    mean = slab_mean * pip
    var = pip * (1 - pip) * jnp.square(slab_mean) + pip * jnp.exp(slab_lnvar)
    beta = mean + eps * jnp.sqrt(var) - bias_d
    topic_beta = A @ jnp.exp(jnp.clip(beta, -10, 10))
    aa = theta @ topic_beta
    kl_pip = (pip * (spike_logit - logit_0)
              - jax.nn.softplus(spike_logit) + jax.nn.softplus(logit_0))
    sq_term = jnp.exp(-lnvar_0) * (jnp.square(slab_mean) + jnp.exp(slab_lnvar))
    kl_g = -0.5 * (1.0 + slab_lnvar - lnvar_0 - sq_term)
    beta_kl = jnp.sum(kl_pip + pip * kl_g)
    return beta, beta_kl, theta, aa


# ---------------------------------------------------------------------------
# self-test
# ---------------------------------------------------------------------------
def _run_case(seed, tree_depth, n_output, batch, tile_g, pip0=0.1, v0=1.0,
              random_params=False):
    n_leaves = pbt_depth_to_leaves(tree_depth)
    n_nodes = num_pbt_nodes(n_leaves)

    key = jax.random.PRNGKey(seed)
    k_z, k_mean, k_eps, k_spk, k_lnv, k_b = jax.random.split(key, 6)

    z = jax.random.normal(k_z, (batch, n_leaves), dtype=jnp.float32)
    slab_mean = jax.random.normal(k_mean, (n_nodes, n_output), dtype=jnp.float32) * math.sqrt(v0)
    if random_params:
        spike_logit = jax.random.normal(k_spk, (n_nodes, n_output), dtype=jnp.float32) * 0.5
        slab_lnvar = (jax.random.normal(k_lnv, (n_nodes, n_output), dtype=jnp.float32) * 0.1
                      + math.log(v0))
        bias_d = jax.random.normal(k_b, (1, n_output), dtype=jnp.float32) * 0.1
    else:
        spike_logit = jnp.zeros((n_nodes, n_output), dtype=jnp.float32)
        slab_lnvar = jnp.full((n_nodes, n_output), math.log(v0), dtype=jnp.float32)
        bias_d = jnp.zeros((1, n_output), dtype=jnp.float32)
    A = pbt_adj(tree_depth)
    eps = jax.random.normal(k_eps, (n_nodes, n_output), dtype=jnp.float32)

    out = tree_spike_slab_decoder_forward(
        z, spike_logit, slab_mean, slab_lnvar, bias_d, eps, A,
        pip0=pip0, v0=v0, tile_g=tile_g)
    jax.block_until_ready(out)
    beta, beta_kl, theta, aa = out

    r_beta, r_kl, r_theta, r_aa = _reference(
        z, spike_logit, slab_mean, slab_lnvar, bias_d, eps, A, pip0=pip0, v0=v0)

    assert np.allclose(np.asarray(beta), np.asarray(r_beta), rtol=5e-3, atol=5e-3)
    assert np.allclose(np.asarray(theta), np.asarray(r_theta), rtol=5e-3, atol=5e-3)
    assert np.allclose(np.asarray(aa), np.asarray(r_aa), rtol=5e-3, atol=5e-3)
    assert np.allclose(float(beta_kl), float(r_kl), rtol=5e-3, atol=5e-3)


if __name__ == "__main__":
    # Case 1: module defaults (tree_depth=3 -> 8 leaves / 15 nodes), G=32, single full-width tile.
    _run_case(seed=0, tree_depth=3, n_output=32, batch=4, tile_g=None, random_params=False)
    # Case 2: auto tile selection -> 2 tiles with a ragged last tile (G=300 -> 256 + 44).
    _run_case(seed=0, tree_depth=3, n_output=300, batch=4, tile_g=None, random_params=True)
    # Case 3: forced small tiles -> 3 tiles (128/128/44), exercises multi-tile KL partials.
    _run_case(seed=0, tree_depth=3, n_output=300, batch=4, tile_g=128, random_params=True)
    print("KERNEL_OK")
</pallas_src>

<mosaic_0001>
module attributes {stable_mosaic.version = 11 : i64} {
  func.func @_decoder_tile_kernel(%arg0: i32, %arg1: memref<4x15xf32, #tpu.memory_space<vmem>>, %arg2: memref<15x32xf32, #tpu.memory_space<vmem>>, %arg3: memref<15x32xf32, #tpu.memory_space<vmem>>, %arg4: memref<15x32xf32, #tpu.memory_space<vmem>>, %arg5: memref<15x32xf32, #tpu.memory_space<vmem>>, %arg6: memref<1x32xf32, #tpu.memory_space<vmem>>, %arg7: memref<15x32xf32, #tpu.memory_space<vmem>>, %arg8: memref<4x32xf32, #tpu.memory_space<vmem>>, %arg9: memref<1x128xf32, #tpu.memory_space<vmem>>) attributes {dimension_semantics = [#tpu.dimension_semantics<parallel>], iteration_bounds = array<i64: 1>, scalar_prefetch = 0 : i64, scratch_operands = 0 : i64, tpu.core_type = #tpu.core_type<tc>, window_params = [{pipeline_mode = #tpu.pipeline_mode<synchronous>, transform_indices = @transform_0, window_bounds = array<i64: 4, 15>}, {transform_indices = @transform_1, window_bounds = array<i64: 15, 32>}, {transform_indices = @transform_2, window_bounds = array<i64: 15, 32>}, {transform_indices = @transform_3, window_bounds = array<i64: 15, 32>}, {transform_indices = @transform_4, window_bounds = array<i64: 15, 32>}, {transform_indices = @transform_5, window_bounds = array<i64: 1, 32>}, {transform_indices = @transform_6, window_bounds = array<i64: 15, 32>}, {transform_indices = @transform_7, window_bounds = array<i64: 4, 32>}, {transform_indices = @transform_8, window_bounds = array<i64: 1, 128>}]} {
    %c0 = arith.constant 0 : index
    %c0_0 = arith.constant 0 : index
    %0 = vector.load %arg2[%c0, %c0_0] : memref<15x32xf32, #tpu.memory_space<vmem>>, vector<15x32xf32>
    %c0_1 = arith.constant 0 : index
    %c0_2 = arith.constant 0 : index
    %1 = vector.load %arg3[%c0_1, %c0_2] : memref<15x32xf32, #tpu.memory_space<vmem>>, vector<15x32xf32>
    %c0_3 = arith.constant 0 : index
    %c0_4 = arith.constant 0 : index
    %2 = vector.load %arg4[%c0_3, %c0_4] : memref<15x32xf32, #tpu.memory_space<vmem>>, vector<15x32xf32>
    %3 = math.exp %2 : vector<15x32xf32>
    %4 = math.absf %0 : vector<15x32xf32>
    %cst = arith.constant 0.000000e+00 : f32
    %5 = vector.broadcast %cst : f32 to vector<15x32xf32>
    %6 = arith.subf %5, %4 : vector<15x32xf32>
    %7 = math.exp %6 : vector<15x32xf32>
    %cst_5 = arith.constant 1.000000e+00 : f32
    %8 = vector.broadcast %cst_5 : f32 to vector<15x32xf32>
    %9 = arith.addf %8, %7 : vector<15x32xf32>
    %cst_6 = arith.constant 1.000000e+00 : f32
    %10 = vector.broadcast %cst_6 : f32 to vector<15x32xf32>
    %11 = arith.divf %10, %9 : vector<15x32xf32>
    %cst_7 = arith.constant 0.000000e+00 : f32
    %12 = vector.broadcast %cst_7 : f32 to vector<15x32xf32>
    %13 = arith.cmpf oge, %0, %12 : vector<15x32xf32>
    %14 = arith.mulf %7, %11 : vector<15x32xf32>
    %15 = arith.select %13, %11, %14 : vector<15x32xi1>, vector<15x32xf32>
    %cst_8 = arith.constant 0.000000e+00 : f32
    %16 = vector.broadcast %cst_8 : f32 to vector<15x32xf32>
    %17 = arith.maximumf %0, %16 : vector<15x32xf32>
    %18 = math.log1p %7 : vector<15x32xf32>
    %19 = arith.addf %17, %18 : vector<15x32xf32>
    %20 = arith.mulf %1, %1 : vector<15x32xf32>
    %cst_9 = arith.constant 1.000000e+00 : f32
    %21 = vector.broadcast %cst_9 : f32 to vector<15x32xf32>
    %22 = arith.subf %21, %15 : vector<15x32xf32>
    %23 = arith.mulf %15, %22 : vector<15x32xf32>
    %24 = arith.mulf %23, %20 : vector<15x32xf32>
    %25 = arith.mulf %15, %3 : vector<15x32xf32>
    %26 = arith.addf %24, %25 : vector<15x32xf32>
    %27 = arith.mulf %1, %15 : vector<15x32xf32>
    %c0_10 = arith.constant 0 : index
    %c0_11 = arith.constant 0 : index
    %28 = vector.load %arg5[%c0_10, %c0_11] : memref<15x32xf32, #tpu.memory_space<vmem>>, vector<15x32xf32>
    %29 = math.sqrt %26 : vector<15x32xf32>
    %30 = arith.mulf %28, %29 : vector<15x32xf32>
    %31 = arith.addf %27, %30 : vector<15x32xf32>
    %c0_12 = arith.constant 0 : index
    %c0_13 = arith.constant 0 : index
    %32 = vector.load %arg6[%c0_12, %c0_13] : memref<1x32xf32, #tpu.memory_space<vmem>>, vector<1x32xf32>
    %33 = vector.broadcast %32 : vector<1x32xf32> to vector<15x32xf32>
    %34 = arith.subf %31, %33 : vector<15x32xf32>
    %c0_14 = arith.constant 0 : index
    %c0_15 = arith.constant 0 : index
    %35 = vector.load %arg7[%c0_14, %c0_15] : memref<15x32xf32, #tpu.memory_space<vmem>>, vector<15x32xf32>
    tpu.vector_store %arg7[%c0_14, %c0_15], %34 {strides = array<i32>} : memref<15x32xf32, #tpu.memory_space<vmem>>, vector<15x32xf32>,
    %cst_16 = arith.constant -1.000000e+01 : f32
    %cst_17 = arith.constant 1.000000e+01 : f32
    %36 = vector.broadcast %cst_16 : f32 to vector<15x32xf32>
    %37 = arith.maximumf %36, %34 : vector<15x32xf32>
    %38 = vector.broadcast %cst_17 : f32 to vector<15x32xf32>
    %39 = arith.minimumf %38, %37 : vector<15x32xf32>
    %40 = math.exp %39 : vector<15x32xf32>
    %c0_18 = arith.constant 0 : index
    %c0_19 = arith.constant 0 : index
    %41 = vector.load %arg1[%c0_18, %c0_19] : memref<4x15xf32, #tpu.memory_space<vmem>>, vector<4x15xf32>
    %cst_20 = arith.constant dense<0.000000e+00> : vector<4x32xf32>
    %42 = tpu.matmul %41, %40, %cst_20 {dimension_numbers = #tpu.dot_dimension_numbers<[1], [0], [0], [1], [0, 0, 1, 1], [], []>} : vector<4x15xf32>, vector<15x32xf32>, vector<4x32xf32> -> vector<4x32xf32>
    %c0_21 = arith.constant 0 : index
    %c0_22 = arith.constant 0 : index
    %43 = vector.load %arg8[%c0_21, %c0_22] : memref<4x32xf32, #tpu.memory_space<vmem>>, vector<4x32xf32>
    tpu.vector_store %arg8[%c0_21, %c0_22], %42 {strides = array<i32>} : memref<4x32xf32, #tpu.memory_space<vmem>>, vector<4x32xf32>,
    %cst_23 = arith.constant -2.19722462 : f32
    %44 = vector.broadcast %cst_23 : f32 to vector<15x32xf32>
    %45 = arith.subf %0, %44 : vector<15x32xf32>
    %46 = arith.mulf %15, %45 : vector<15x32xf32>
    %47 = arith.subf %46, %19 : vector<15x32xf32>
    %cst_24 = arith.constant 0.105360515 : f32
    %48 = vector.broadcast %cst_24 : f32 to vector<15x32xf32>
    %49 = arith.addf %47, %48 : vector<15x32xf32>
    %50 = arith.addf %20, %3 : vector<15x32xf32>
    %cst_25 = arith.constant 1.000000e+00 : f32
    %51 = vector.broadcast %cst_25 : f32 to vector<15x32xf32>
    %52 = arith.mulf %51, %50 : vector<15x32xf32>
    %cst_26 = arith.constant 1.000000e+00 : f32
    %53 = vector.broadcast %cst_26 : f32 to vector<15x32xf32>
    %54 = arith.addf %53, %2 : vector<15x32xf32>
    %cst_27 = arith.constant 0.000000e+00 : f32
    %55 = vector.broadcast %cst_27 : f32 to vector<15x32xf32>
    %56 = arith.subf %54, %55 : vector<15x32xf32>
    %57 = arith.subf %56, %52 : vector<15x32xf32>
    %cst_28 = arith.constant -5.000000e-01 : f32
    %58 = vector.broadcast %cst_28 : f32 to vector<15x32xf32>
    %59 = arith.mulf %58, %57 : vector<15x32xf32>
    %60 = arith.mulf %15, %59 : vector<15x32xf32>
    %61 = arith.addf %49, %60 : vector<15x32xf32>
    %62 = vector.shape_cast %61 : vector<15x32xf32> to vector<1x15x32xf32>
    %cst_29 = arith.constant dense<0.000000e+00> : vector<1xf32>
    %63 = vector.multi_reduction <add>, %62, %cst_29 [1, 2] : vector<1x15x32xf32> to vector<1xf32>
    %64 = vector.shape_cast %63 : vector<1xf32> to vector<1x1x1xf32>
    %65 = vector.extract %64[0, 0, 0] : f32 from vector<1x1x1xf32>
    %66 = vector.broadcast %65 : f32 to vector<1x1xf32>
    %67 = vector.shape_cast %66 : vector<1x1xf32> to vector<1x1xf32>
    %68 = vector.broadcast %67 : vector<1x1xf32> to vector<1x128xf32>
    %c0_30 = arith.constant 0 : index
    %c0_31 = arith.constant 0 : index
    %69 = vector.load %arg9[%c0_30, %c0_31] : memref<1x128xf32, #tpu.memory_space<vmem>>, vector<1x128xf32>
    tpu.vector_store %arg9[%c0_30, %c0_31], %68 {strides = array<i32>} : memref<1x128xf32, #tpu.memory_space<vmem>>, vector<1x128xf32>,
    return
  }
  func.func @transform_0(%arg0: i32) -> (i32, i32) {
    %c0_i32 = arith.constant 0 : i32
    %c0_i32_0 = arith.constant 0 : i32
    %c0_i32_1 = arith.constant 0 : i32
    return %c0_i32, %c0_i32_0 : i32, i32
  }
  func.func @transform_1(%arg0: i32) -> (i32, i32) {
    %c0_i32 = arith.constant 0 : i32
    %c0_i32_0 = arith.constant 0 : i32
    return %c0_i32, %arg0 : i32, i32
  }
  func.func @transform_2(%arg0: i32) -> (i32, i32) {
    %c0_i32 = arith.constant 0 : i32
    %c0_i32_0 = arith.constant 0 : i32
    return %c0_i32, %arg0 : i32, i32
  }
  func.func @transform_3(%arg0: i32) -> (i32, i32) {
    %c0_i32 = arith.constant 0 : i32
    %c0_i32_0 = arith.constant 0 : i32
    return %c0_i32, %arg0 : i32, i32
  }
  func.func @transform_4(%arg0: i32) -> (i32, i32) {
    %c0_i32 = arith.constant 0 : i32
    %c0_i32_0 = arith.constant 0 : i32
    return %c0_i32, %arg0 : i32, i32
  }
  func.func @transform_5(%arg0: i32) -> (i32, i32) {
    %c0_i32 = arith.constant 0 : i32
    %c0_i32_0 = arith.constant 0 : i32
    return %c0_i32, %arg0 : i32, i32
  }
  func.func @transform_6(%arg0: i32) -> (i32, i32) {
    %c0_i32 = arith.constant 0 : i32
    %c0_i32_0 = arith.constant 0 : i32
    return %c0_i32, %arg0 : i32, i32
  }
  func.func @transform_7(%arg0: i32) -> (i32, i32) {
    %c0_i32 = arith.constant 0 : i32
    %c0_i32_0 = arith.constant 0 : i32
    return %c0_i32, %arg0 : i32, i32
  }
  func.func @transform_8(%arg0: i32) -> (i32, i32) {
    %c0_i32 = arith.constant 0 : i32
    %c0_i32_0 = arith.constant 0 : i32
    return %c0_i32, %arg0 : i32, i32
  }
}

</mosaic_0001>

<bundles_post_ra>
// kernel: tpu_custom_call.1
= control target key start
LH: loop header
LB: loop body
LE: loop exit
PB: predicated region body
PF: predicated region fallthrough
CT: control target
= control target key end

     0   :  { %14 = vsyncpa [#allocation3], 0  ;;  %s723_s0 = inlined_call_operand.hbm [shape: f32[4,15], index: 0, kind: input, shape index: {}]   ;;  %s724_s1 = inlined_call_operand.hbm [shape: f32[15,32], index: 1, kind: input, shape index: {}]   ;;  %s725_s2 = inlined_call_operand.hbm [shape: f32[15,32], index: 2, kind: input, shape index: {}]   ;;  %s726_s3 = inlined_call_operand.hbm [shape: f32[15,32], index: 3, kind: input, shape index: {}]   ;;  %s727_s4 = inlined_call_operand.hbm [shape: f32[15,32], index: 4, kind: input, shape index: {}]   ;;  %s728_s5 = inlined_call_operand.vmem [shape: f32[1,32], index: 5, kind: input, shape index: {}]   ;;  %s729_s6 = inlined_call_operand.hbm [shape: f32[15,32], index: 6, kind: output, shape index: {0}]   ;;  %s730_s7 = inlined_call_operand.hbm [shape: f32[4,32], index: 7, kind: output, shape index: {1}]   ;;  %s731_s8 = inlined_call_operand.hbm [shape: f32[1,128], index: 8, kind: output, shape index: {2}]  }
   0x1   :  { %15 = vsyncpa [#allocation6], 0 }
   0x2   :  { %16 = vsyncpa [#allocation9], 0 }
   0x3   :  { %17 = vsyncpa [#allocation4], 0 }
   0x4   :  { %18 = vsyncpa [#allocation13], 0  ;;  %s587_s27 = smov [#allocation5]  }
   0x5   :  { %s34_s28 = sshll.u32 %s587_s27, 4  ;;  %s35_s28 = int_to_ptr.vmem [resolvable:$true] %s34_s28 }
   0x6   :  { %s425_s29 = scalar_lea.vmem %s35_s28, 256  ;;  %p430_p1 = scmp.lt.s32.totalorder %s35_s28, %s35_s28 }
   0x7   :  { %p426_p0 = scmp.ne.s32.totalorder %s35_s28, %s425_s29  ;;  %p431_p2 = scmp.lt.s32.totalorder %s425_s29, %s425_s29 }
   0x9   :  { %p432_p3 = por %p431_p2, %p430_p1 }
   0xb   :  { %p433_p4 = pnand %p432_p3, %p426_p0 }
   0xd   :  { %436 = shalt.err (!%p433_p4)
}
   0xe   :  { %s588_s30 = smov 128   ;;  %s589_s9 = smov 8  }
   0xf   :  { %40 = dma.hbm_to_vmem [thread:$0]  %s724_s1, 256, %s35_s28, [#allocation6], %s588_s30, %s588_s30, %s589_s9  }
  0x10   :  { %s590_s12 = smov [#allocation8]   ;;  %s591_s14 = smov [#allocation2]  }
  0x11   :  { %s58_s13 = sshll.u32 %s590_s12, 4  ;;  %s25_s15 = sshll.u32 %s591_s14, 4  ;;  %s59_s13 = int_to_ptr.vmem [resolvable:$true] %s58_s13  ;;  %s26_s15 = int_to_ptr.vmem [resolvable:$true] %s25_s15 }
  0x12   :  { %s445_s16 = scalar_lea.vmem %s59_s13, 256  ;;  %p450_p6 = scmp.lt.s32.totalorder %s59_s13, %s59_s13 }
  0x13   :  { %p446_p5 = scmp.ne.s32.totalorder %s59_s13, %s445_s16  ;;  %p451_p7 = scmp.lt.s32.totalorder %s445_s16, %s445_s16 }
  0x15   :  { %p452_p8 = por %p451_p7, %p450_p6 }
  0x17   :  { %p453_p9 = pnand %p452_p8, %p446_p5 }
  0x19   :  { %456 = shalt.err (!%p453_p9)
}
  0x1a   :  { %64 = dma.hbm_to_vmem [thread:$0]  %s726_s3, 256, %s59_s13, [#allocation9], %s588_s30, %s588_s30, %s589_s9  }
  0x1b   :  { %s465_s1 = scalar_lea.vmem %s26_s15, 64  ;;  %p470_p11 = scmp.lt.s32.totalorder %s26_s15, %s26_s15 }
  0x1c   :  { %p466_p10 = scmp.ne.s32.totalorder %s26_s15, %s465_s1  ;;  %p471_p12 = scmp.lt.s32.totalorder %s465_s1, %s465_s1 }
  0x1e   :  { %p472_p13 = por %p471_p12, %p470_p11 }
  0x20   :  { %p473_p0 = pnand %p472_p13, %p466_p10 }
  0x22   :  { %476 = shalt.err (!%p473_p0)
}
  0x23   :  { %28 = dma.hbm_to_vmem [thread:$0]  %s723_s0, 64, %s26_s15, [#allocation3]  }
  0x24   :  { %s592_s21 = smov [#allocation7]   ;;  %s593_s23 = smov [#allocation10]  }
  0x25   :  { %s46_s22 = sshll.u32 %s592_s21, 4  ;;  %s70_s24 = sshll.u32 %s593_s23, 4  ;;  %s47_s22 = int_to_ptr.vmem [resolvable:$true] %s46_s22  ;;  %s71_s24 = int_to_ptr.vmem [resolvable:$true] %s70_s24 }
  0x26   :  { %s485_s25 = scalar_lea.vmem %s47_s22, 256  ;;  %p490_p2 = scmp.lt.s32.totalorder %s47_s22, %s47_s22 }
  0x27   :  { %p486_p1 = scmp.ne.s32.totalorder %s47_s22, %s485_s25  ;;  %p491_p3 = scmp.lt.s32.totalorder %s485_s25, %s485_s25 }
  0x29   :  { %p492_p4 = por %p491_p3, %p490_p2 }
  0x2b   :  { %p493_p5 = pnand %p492_p4, %p486_p1 }
  0x2d   :  { %496 = shalt.err (!%p493_p5)
}
  0x2e   :  { %52 = dma.hbm_to_vmem [thread:$0]  %s725_s2, 256, %s47_s22, [#allocation6], %s588_s30, %s588_s30, %s589_s9  }
  0x2f   :  { %s505_s0 = scalar_lea.vmem %s71_s24, 256  ;;  %p510_p7 = scmp.lt.s32.totalorder %s71_s24, %s71_s24 }
  0x30   :  { %p506_p6 = scmp.ne.s32.totalorder %s71_s24, %s505_s0  ;;  %p511_p8 = scmp.lt.s32.totalorder %s505_s0, %s505_s0 }
  0x32   :  { %p512_p9 = por %p511_p8, %p510_p7 }
  0x34   :  { %p513_p10 = pnand %p512_p9, %p506_p6 }
  0x36   :  { %516 = shalt.err (!%p513_p10)
}
  0x37   :  { %76 = dma.hbm_to_vmem [thread:$0]  %s727_s4, 256, %s71_s24, [#allocation9], %s588_s30, %s588_s30, %s589_s9  }
  0x38   :  { %577 = dma.done.wait [#allocation3], 64  }
  0x39   :  { %578 = vsyncadd [#allocation3], 4294967232 }
  0x3a   :  { %579 = dma.done.wait [#allocation6], 512  }
  0x3b   :  { %580 = vsyncadd [#allocation6], 4294966784 }
  0x3c   :  { %581 = dma.done.wait [#allocation9], 512  }
  0x3d   :  { %582 = vsyncadd [#allocation9], 4294966784  ;;  %v594_v0 = vmov 0.0   ;;  %vm595_vm0 = vmmov 0   ;;  %v673_v1 = vld [vmem:[#allocation5] sm:$0xff]  ;;  %v679_v17 = vld [vmem:[#allocation7] sm:$0xff] }
  0x3e   :  { %372 = vmatprep.subr.mxu0 %v594_v0  ;;  %376 = vmatprep.mubr.msk.f32.mxu0 %vm595_vm0, %v594_v0  ;;  %v675_v2 = vld [vmem:[#allocation5 + $0x8] sm:$0x7f]  ;;  %v104_v3 = vand.u32 2147483647, %v673_v1  ;;  %v98_v9 = vld [vmem:[#allocation8] sm:$0xff]  ;;  %v146_v21 = vmul.f32 %v679_v17, %v679_v17  ;;  %vm118_vm1 = vcmp.ge.f32.partialorder %v673_v1, 0.0 }
  0x3f   :  { %v105_v4 = vand.u32 2147483647, %v675_v2  ;;  %v99_v10 = vld [vmem:[#allocation8 + $0x8] sm:$0x7f]  ;;  %v100_v11 = vmul.f32 1.442695, %v98_v9 }
  0x40   :  { %v106_v5 = vsub.f32 0.0, %v104_v3  ;;  %v102_v12 = vmul.f32 1.442695, %v99_v10  ;;  %v681_v18 = vld [vmem:[#allocation7 + $0x8] sm:$0x7f]  ;;  %v292_v26 = vadd.f32 1.0, %v98_v9 }
  0x41   :  { %v107_v6 = vsub.f32 0.0, %v105_v4  ;;  %v147_v23 = vmul.f32 %v681_v18, %v681_v18  ;;  %v293_v29 = vadd.f32 1.0, %v99_v10  ;;  %vm119_vm2 = vcmp.ge.f32.partialorder %v675_v2, 0.0 }
  0x42   :  { %v108_v7 = vmul.f32 1.442695, %v106_v5  ;;  %v124_v34 = vmax.f32 %v673_v1, 0.0  ;;  %v125_v38 = vmax.f32 %v675_v2, 0.0  ;;  %v367_v45 = vadd.f32 2.1972246, %v673_v1 }
  0x43   :  { %v110_v8 = vmul.f32 1.442695, %v107_v6  ;;  %v368_v49 = vadd.f32 2.1972246, %v675_v2  ;;  %vm189_vm5 = vcmask 261120   ;;  %vm191_vm6 = vcmask 260096  }
  0x44   :  { %393 = vpow2.f32 %v108_v7  ;;  %vm206_vm11 = vcmask 1046528   ;;  %vm202_vm12 = vcmask 121856  }
  0x45   :  { %395 = vpow2.f32 %v110_v8 }
  0x46   :  { %397 = vpow2.f32 %v100_v11 }
  0x47   :  { %399 = vpow2.f32 %v102_v12 }
  0x51   :  { %v394_v13 = vpop.eup %393 }
  0x52   :  { %v396_v14 = vpop.eup %395  ;;  %v112_v15 = vadd.f32 1.0, %v394_v13  ;;  %v129_v19 = vmul.f32 -0.5, %v394_v13  ;;  %v132_v30 = vand.u32 2147483647, %v394_v13 }
  0x53   :  { %v113_v16 = vadd.f32 1.0, %v396_v14  ;;  %v138_v20 = vmul.f32 -0.5, %v396_v14  ;;  %v398_v22 = vpop.eup %397  ;;  %v141_v32 = vand.u32 2147483647, %v396_v14 }
  0x54   :  { %401 = vrcp.f32 %v112_v15  ;;  %v400_v24 = vpop.eup %399  ;;  %v290_v25 = vadd.f32 %v398_v22, %v146_v21  ;;  %v130_v27 = vadd.f32 1.0, %v129_v19  ;;  %vm691_vm3 = vcmp.lt.f32.partialorder %v132_v30, 0.0004427343 }
  0x55   :  { %403 = vrcp.f32 %v113_v16  ;;  %v291_v28 = vadd.f32 %v400_v24, %v147_v23  ;;  %v139_v31 = vadd.f32 1.0, %v138_v20  ;;  %vm142_vm4 = vcmp.lt.f32.partialorder %v141_v32, 0.0004427343 }
  0x56   :  { %405 = vlog2.f32 %v112_v15  ;;  %v294_v35 = vsub.f32 %v292_v26, %v290_v25  ;;  %v131_v39 = vmul.f32 %v394_v13, %v130_v27  ;;  %v160_v25 = vld [vmem:[#allocation10] sm:$0xff] }
  0x57   :  { %407 = vlog2.f32 %v113_v16  ;;  %v295_v40 = vsub.f32 %v293_v29, %v291_v28  ;;  %v140_v44 = vmul.f32 %v396_v14, %v139_v31  ;;  %v161_v28 = vld [vmem:[#allocation10 + $0x8] sm:$0x7f] }
  0x58   :  { %v296_v53 = vmul.f32 -0.5, %v294_v35 }
  0x59   :  { %v297_v57 = vmul.f32 -0.5, %v295_v40 }
  0x61   :  { %v402_v33 = vpop.eup %401 }
  0x62   :  { %v404_v36 = vpop.eup %403  ;;  %v120_v37 = vmul.f32 %v402_v33, %v394_v13 }
  0x63   :  { %v406_v41 = vpop.eup %405  ;;  %v121_v42 = vmul.f32 %v404_v36, %v396_v14 }
  0x64   :  { %v408_v46 = vpop.eup %407  ;;  %v122_v47 = vsel %vm118_vm1, %v402_v33, %v120_v37  ;;  %v128_v48 = vmul.f32 0.6931472, %v406_v41  ;;  %v362_v37 = vld [vmem:[%s728_s5] ss:$0 sm:$0xff]  ;;  %s596_s5 = smov [#allocation11]  }
  0x65   :  { %v123_v50 = vsel %vm119_vm2, %v404_v36, %v121_v42  ;;  %v137_v51 = vmul.f32 0.6931472, %v408_v46  ;;  %v148_v52 = vsub.f32 1.0, %v122_v47  ;;  %v154_v56 = vmul.f32 %v398_v22, %v122_v47  ;;  %s321_s29 = sshll.u32 %s596_s5, 4  ;;  %s322_s29 = int_to_ptr.vmem [resolvable:$true] %s321_s29 }
  0x66   :  { %v134_v54 = vsel %vm691_vm3, %v131_v39, %v128_v48  ;;  %v149_v55 = vsub.f32 1.0, %v123_v50  ;;  %v155_v61 = vmul.f32 %v400_v24, %v123_v50  ;;  %v284_v1 = vmul.f32 %v367_v45, %v122_v47  ;;  %v201_v45 = vld [vmem:[#allocation2] sm:$0xf]  ;;  %s517_s10 = scalar_lea.vmem %s322_s29, 256  ;;  %p522_p12 = scmp.lt.s32.totalorder %s322_s29, %s322_s29 }
  0x67   :  { %v143_v58 = vsel %vm142_vm4, %v140_v44, %v137_v51  ;;  %v144_v59 = vadd.f32 %v134_v54, %v124_v34  ;;  %v150_v60 = vmul.f32 %v148_v52, %v122_v47  ;;  %v285_v3 = vmul.f32 %v368_v49, %v123_v50  ;;  %p518_p11 = scmp.ne.s32.totalorder %s322_s29, %s517_s10  ;;  %p523_p13 = scmp.lt.s32.totalorder %s517_s10, %s517_s10 }
  0x68   :  { %v145_v62 = vadd.f32 %v143_v58, %v125_v38  ;;  %v151_v63 = vmul.f32 %v149_v55, %v123_v50  ;;  %v298_v8 = vmul.f32 %v296_v53, %v122_v47  ;;  %v299_v9 = vmul.f32 %v297_v57, %v123_v50 }
  0x69   :  { %v152_v4 = vmul.f32 %v150_v60, %v146_v21  ;;  %v286_v5 = vsub.f32 %v284_v1, %v144_v59  ;;  %v158_v27 = vmul.f32 %v122_v47, %v679_v17  ;;  %v159_v30 = vmul.f32 %v123_v50, %v681_v18  ;;  %p524_p0 = por %p523_p13, %p522_p12 }
  0x6a   :  { %v153_v2 = vmul.f32 %v151_v63, %v147_v23  ;;  %v287_v6 = vsub.f32 %v285_v3, %v145_v62 }
  0x6b   :  { %v156_v7 = vadd.f32 %v154_v56, %v152_v4  ;;  %v288_v11 = vadd.f32 0.105360515, %v286_v5  ;;  %p525_p1 = pnand %p524_p0, %p518_p11 }
  0x6c   :  { %v157_v10 = vadd.f32 %v155_v61, %v153_v2  ;;  %v289_v12 = vadd.f32 0.105360515, %v287_v6 }
  0x6d   :  { %409 = vrsqrt.f32 %v156_v7  ;;  %v300_v13 = vadd.f32 %v298_v8, %v288_v11  ;;  %vm164_vm7 = vcmp.eq.f32.partialorder %v156_v7, inf  ;;  %v167_v21 = vand.u32 2147483648, %v156_v7 }
  0x6e   :  { %411 = vrsqrt.f32 %v157_v10  ;;  %v301_v14 = vadd.f32 %v299_v9, %v289_v12  ;;  %vm166_vm8 = vcmp.eq.f32.partialorder %v156_v7, 0.0  ;;  %vm171_vm9 = vcmp.eq.f32.partialorder %v157_v10, inf }
  0x6f   :  { %v302_v15 = vsel %vm189_vm5, %v300_v13, 0.0  ;;  %v174_v24 = vand.u32 2147483648, %v157_v10  ;;  %vm173_vm10 = vcmp.eq.f32.partialorder %v157_v10, 0.0 }
  0x70   :  { %v303_v16 = vsel %vm191_vm6, %v301_v14, 0.0 }
  0x71   :  { %v304_v19 = vadd.f32 %v303_v16, %v302_v15 }
  0x73   :  { %305 = vadd.xlane.f32.xlu0 %v304_v19 }
  0x7a   :  { %v410_v20 = vpop.eup %409 }
  0x7b   :  { %v412_v22 = vpop.eup %411  ;;  %v163_v23 = vmul.f32 %v410_v20, %v156_v7 }
  0x7c   :  { %v170_v26 = vmul.f32 %v412_v22, %v157_v10 }
  0x7d   :  { %v165_v29 = vsel %vm164_vm7, %v156_v7, %v163_v23 }
  0x7e   :  { %v168_v31 = vsel %vm166_vm8, %v167_v21, %v165_v29  ;;  %v172_v32 = vsel %vm171_vm9, %v157_v10, %v170_v26 }
  0x7f   :  { %v175_v33 = vsel %vm173_vm10, %v174_v24, %v172_v32  ;;  %v176_v34 = vmul.f32 %v168_v31, %v160_v25 }
  0x80   :  { %v177_v35 = vmul.f32 %v175_v33, %v161_v28 }
  0x81   :  { %v178_v36 = vadd.f32 %v176_v34, %v158_v27 }
  0x82   :  { %v179_v38 = vadd.f32 %v177_v35, %v159_v30 }
  0x83   :  { %v187_v39 = vsub.f32 %v178_v36, %v362_v37 }
  0x84   :  { %v188_v40 = vsub.f32 %v179_v38, %v362_v37 }
  0x85   :  { %v363_v41 = vclamps-f32 %v187_v39, 10.0  ;;  %190 = vst.msk [vmem:[#allocation11] sm:$0xff] %vm189_vm5, %v187_v39 }
  0x86   :  { %v364_v17 = vclamps-f32 %v188_v40, 10.0  ;;  %192 = vst.msk [vmem:[#allocation11 + $0x8] sm:$0x7f] %vm191_vm6, %v188_v40 }
  0x87   :  { %v197_v18 = vmul.f32 1.442695, %v363_v41 }
  0x88   :  { %v199_v42 = vmul.f32 1.442695, %v364_v17 }
  0x89   :  { %413 = vpow2.f32 %v197_v18 }
  0x8a   :  { %415 = vpow2.f32 %v199_v42 }
  0x96   :  { %v414_v43 = vpop.eup %413 }
  0x97   :  { %v416_v44 = vpop.eup %415 }
  0x98   :  { %373 = vmatpush3.msk.msra.mxu0 %vm206_vm11, %v416_v44 }
  0x99   :  { %374 = vmatprep.subr.mxu0 %v594_v0 }
  0x9a   :  { %375 = vmatpush3.msra.mxu0 %v414_v43 }
  0x9b   :  { %377 = vmatmul.mubr.msk.f32.vlgmr.msra.gmra.mxu0 %vm202_vm12, %v201_v45 }
  0x9c   :  { %528 = shalt.err (!%p525_p1)
}
  0x9d   :  { %327 = dma.vmem_to_hbm [thread:$0]  %s322_s29, 256, %s729_s6, [#allocation4], %s588_s30, %s588_s30, %s589_s9   ;;  %vm280_vm13 = vcmask 257024  }
  0x9e   :  { %s597_s14 = smov [#allocation12]   ;;  %s598_s16 = smov [#allocation14]  }
  0x9f   :  { %s334_s15 = sshll.u32 %s597_s14, 4  ;;  %s344_s17 = sshll.u32 %s598_s16, 4  ;;  %s335_s15 = int_to_ptr.vmem [resolvable:$true] %s334_s15  ;;  %s345_s17 = int_to_ptr.vmem [resolvable:$true] %s344_s17 }
  0xa0   :  { %s537_s6 = scalar_lea.vmem %s335_s15, 64  ;;  %p542_p3 = scmp.lt.s32.totalorder %s335_s15, %s335_s15 }
  0xa1   :  { %p538_p2 = scmp.ne.s32.totalorder %s335_s15, %s537_s6  ;;  %p543_p4 = scmp.lt.s32.totalorder %s537_s6, %s537_s6 }
  0xa3   :  { %p544_p5 = por %p543_p4, %p542_p3 }
  0xa5   :  { %p545_p6 = pnand %p544_p5, %p538_p2 }
  0xfc   :  { %v306_v0 = vpop.xlane.xlu0 %305 }
  0xfd   :  { %v307_v46 = vrot.slane %v306_v0, 4 }
  0xff   :  { %v308_v47 = vadd.f32 %v307_v46, %v306_v0 }
 0x101   :  { %v309_v48 = vrot.slane %v308_v47, 2 }
 0x103   :  { %v310_v49 = vadd.f32 %v309_v48, %v308_v47 }
 0x105   :  { %v311_v50 = vrot.slane %v310_v49, 1 }
 0x107   :  { %v312_v51 = vadd.f32 %v311_v50, %v310_v49 }
 0x109   :  { %379 = vpush %v312_v51 }
 0x13a   :  { %s380_s13 = spop %379 }
 0x13b   :  { %v314_v52 = vstv %s380_s13 }
 0x13c   :  { %315 = vst [vmem:[#allocation14] sm:$0x1] %v314_v52 }
 0x15b   :  { %v276_v53 = vpop.f32.mrf.mxu0 }
 0x15c   :  { %281 = vst.msk [vmem:[#allocation12] sm:$0xf] %vm280_vm13, %v276_v53 }
 0x15d   :  { %v378_v54 = vpop.f32.mrf.mxu0 }
 0x15e   :  { %548 = shalt.err (!%p545_p6)
}
 0x15f   :  { %337 = dma.vmem_to_hbm [thread:$0]  %s335_s15, 64, %s730_s7, [#allocation13]  }
 0x160   :  { %s557_s18 = scalar_lea.vmem %s345_s17, 16  ;;  %s561_s1 = scalar_lea.vmem %s345_s17, 32 }
 0x161   :  { %p558_p7 = scmp.ne.s32.totalorder %s345_s17, %s557_s18  ;;  %p562_p8 = scmp.lt.s32.totalorder %s345_s17, %s345_s17 }
 0x162   :  { %p563_p9 = scmp.lt.s32.totalorder %s561_s1, %s557_s18 }
 0x164   :  { %p564_p10 = por %p563_p9, %p562_p8 }
 0x166   :  { %p565_p11 = pnand %p564_p10, %p558_p7 }
 0x168   :  { %568 = shalt.err (!%p565_p11)
}
 0x169   :  { %347 = dma.vmem_to_hbm [thread:$0]  %s345_s17, 16, %s731_s8, [#allocation13]  }
 0x16a   :  { %583 = dma.done.wait [#allocation4], 256  }
 0x16b   :  { %584 = vsyncadd [#allocation4], 4294967040 }
 0x16c   :  { %585 = dma.done.wait [#allocation13], 80  }
 0x16d   :  { %586 = vsyncadd [#allocation13], 4294967216 }
 0x16e   :  { %357 = vsyncpa [#allocation3], 1 }
 0x16f   :  { %358 = vsyncpa [#allocation6], 1 }
 0x170   :  { %359 = vsyncpa [#allocation9], 1 }
 0x171   :  { %360 = vsyncpa [#allocation4], 1 }
 0x172   :  { %361 = vsyncpa [#allocation13], 1 }

</bundles_post_ra>
